<compile_context>
chip_gen: v5e
topology: v5e:2x2
jax: 0.10.0
libtpu: 0.0.40
codegen_flags: <defaults>
</compile_context>

<pallas_src>
import functools

import jax
import jax.numpy as jnp
from jax.experimental import pallas as pl
from jax.experimental.pallas import tpu as pltpu

HIDDEN = 64            # per-branch hidden width (MLPPolicy uses 64)
FUSED = 2 * HIDDEN     # actor|critic fused width -> exactly one 128-lane tile
MIN_TILES = 4          # aim for >=4 grid steps: v7x megacore sharding + DMA/compute overlap
MAX_TILE_B = 2048      # 2048-row x tile + bf16 slab, double-buffered ~= a few MiB << VMEM


def _cdiv(a, b):
    return (a + b - 1) // b


def _round_up(n, m):
    return _cdiv(n, m) * m


def mlp_policy_kernel(x_ref, stats_ref, w1_ref, w2_ref, wh_ref, bias_ref, slab_ref):
    # ObsNorm with static running stats (clip=5), in f32:
    #   xn = clip(x * inv_std + shift, +-5)   with inv_std/shift precomputed at param-prep time.
    x = x_ref[...]                                        # f32 (tile_b, num_inputs)
    xn = jnp.clip(x * stats_ref[0:1, :] + stats_ref[1:2, :], -5.0, 5.0)
    xn = xn.astype(w1_ref.dtype)                          # bf16 only for the MXU operand

    b = bias_ref[...]                                     # (3, 128) f32: [b1; b2; b_head]

    # Layer 1: fused actor|critic -> single 128-wide MXU matmul, f32 accumulation.
    h1 = jnp.tanh(jnp.dot(xn, w1_ref[...], preferred_element_type=jnp.float32)
                  + b[0:1, :])

    # Layer 2: block-diagonal fused actor|critic matmul (zero off-diagonal blocks keep
    # the branches exactly independent).
    h2 = jnp.tanh(jnp.dot(h1.astype(w2_ref.dtype), w2_ref[...],
                          preferred_element_type=jnp.float32) + b[1:2, :])
    # TODO(synk): on v6e/v7x (bf16 VPU/EUP) the bias add + tanh could run in bf16;
    # kept f32 so the same kernel is also optimal/correct on v5e.

    # Fused epilogue: one (128,128) matmul producing the whole lane-dense output slab:
    #   cols 0..63  <- identity block (hidden_actor copy; exact, since the slab is bf16 anyway)
    #   col  64     <- value head (critic half)
    #   cols 65..   <- action mean head (actor half), rest zero.
    slab = (jnp.dot(h2.astype(wh_ref.dtype), wh_ref[...],
                    preferred_element_type=jnp.float32) + b[2:3, :])
    slab_ref[...] = slab.astype(slab_ref.dtype)           # single bf16 (tile_b, 128) store
    # TODO(synk): stochastic sampling (deterministic=False: mean + exp(logstd)*noise)
    # is not implemented in-kernel; deterministic=True semantics only.


def fuse_params(p, compute_dtype=jnp.bfloat16):
    """Build the fused, lane-aligned parameter set ONCE per policy update.

    This is deliberately NOT inside the per-call forward jit: at act()-time batch sizes
    the dozen tiny XLA ops here would dominate wall-clock over the kernel itself.
    """
    H = HIDDEN
    A = p["wm"].shape[1]
    assert H + 1 + A <= FUSED, "num_actions too large for the fused 128-lane head"

    inv_std = 1.0 / (p["obs_std"] + 1e-8)
    shift = -p["obs_mean"] * inv_std
    stats = jnp.concatenate([inv_std, shift], axis=0)                 # (2, num_inputs) f32

    w1 = jnp.concatenate([p["wa1"], p["wc1"]], axis=1)                # (in, 128)

    w2 = jnp.zeros((FUSED, FUSED), jnp.float32)
    w2 = w2.at[:H, :H].set(p["wa2"]).at[H:, H:].set(p["wc2"])         # block-diagonal

    wh = jnp.zeros((FUSED, FUSED), jnp.float32)
    wh = wh.at[:H, :H].set(jnp.eye(H, dtype=jnp.float32))             # hidden_actor passthrough
    wh = wh.at[H:, H:H + 1].set(p["wv"])                              # value <- critic half
    wh = wh.at[:H, H + 1:H + 1 + A].set(p["wm"])                      # action <- actor half

    bias = jnp.zeros((3, FUSED), jnp.float32)
    bias = bias.at[0:1, :].set(jnp.concatenate([p["ba1"], p["bc1"]], axis=1))
    bias = bias.at[1:2, :].set(jnp.concatenate([p["ba2"], p["bc2"]], axis=1))
    bias = bias.at[2, H].set(p["bv"][0, 0])
    bias = bias.at[2, H + 1:H + 1 + A].set(p["bm"][0])

    return dict(stats=stats,
                w1=w1.astype(compute_dtype),
                w2=w2.astype(compute_dtype),
                wh=wh.astype(compute_dtype),
                bias=bias)


@functools.partial(jax.jit, static_argnames=("num_actions",))
def mlp_policy_forward_act(x, fused, num_actions):
    B, num_inputs = x.shape
    H = HIDDEN
    A = num_actions

    # Adaptive batch tiling: >= MIN_TILES grid steps when the batch allows it (pipelining +
    # v7x megacore), big lane/sublane-aligned tiles at rollout scale, capped well under VMEM.
    tile_b = min(MAX_TILE_B, max(8, _round_up(_cdiv(B, MIN_TILES), 8)))
    grid_b = _cdiv(B, tile_b)        # ragged last tile handled by Pallas masking (no jnp.pad)

    batch_map = lambda i: (i, 0)     # tiles marching down the batch
    resident = lambda i: (0, 0)      # weights/stats/biases stay resident in VMEM

    slab = pl.pallas_call(
        mlp_policy_kernel,
        out_shape=jax.ShapeDtypeStruct((B, FUSED), jnp.bfloat16),
        grid=(grid_b,),
        in_specs=[
            pl.BlockSpec((tile_b, num_inputs), batch_map),    # x (float32, no wrapper cast)
            pl.BlockSpec((2, num_inputs), resident),          # [inv_std; shift]
            pl.BlockSpec((num_inputs, FUSED), resident),      # W1 = [wa1 | wc1]
            pl.BlockSpec((FUSED, FUSED), resident),           # W2 block-diag
            pl.BlockSpec((FUSED, FUSED), resident),           # fused head [I | value | action]
            pl.BlockSpec((3, FUSED), resident),               # [b1; b2; b_head]
        ],
        out_specs=pl.BlockSpec((tile_b, FUSED), batch_map),   # bf16 [ha | value | action | 0]
        compiler_params=pltpu.CompilerParams(
            dimension_semantics=("parallel",)),
    )(x, fused["stats"], fused["w1"], fused["w2"], fused["wh"], fused["bias"])

    # Tiny post-slices (static) — the bulk HBM writeback was the single bf16 slab above.
    hidden_actor = slab[:, :H]                                # bf16
    value = slab[:, H:H + 1].astype(jnp.float32)              # NOTE: bf16-limited precision;
    action = slab[:, H + 1:H + 1 + A].astype(jnp.float32)     # keep a separate f32 value head
    return value, hidden_actor, action                        # if PPO value-loss is sensitive.


def init_params(key, num_inputs, num_actions):
    """Mimic weights_init_mlp: N(0,1) weights normalized per output unit, zero bias;
    DiagGaussian fc_mean scaled by 0.01."""
    ks = jax.random.split(key, 6)

    def lin(kw, fan_in, fan_out, scale=1.0):
        w = jax.random.normal(kw, (fan_in, fan_out), jnp.float32)
        w = w / jnp.sqrt(jnp.sum(w * w, axis=0, keepdims=True))
        return w * scale, jnp.zeros((1, fan_out), jnp.float32)

    wa1, ba1 = lin(ks[0], num_inputs, HIDDEN)
    wa2, ba2 = lin(ks[1], HIDDEN, HIDDEN)
    wc1, bc1 = lin(ks[2], num_inputs, HIDDEN)
    wc2, bc2 = lin(ks[3], HIDDEN, HIDDEN)
    wv, bv = lin(ks[4], HIDDEN, 1)
    wm, bm = lin(ks[5], HIDDEN, num_actions, scale=0.01)
    # TODO(synk): ObsNorm's running mean/std *update* is stateful training logic;
    # here we apply static stats (identity-initialized) inside the kernel.
    return dict(wa1=wa1, ba1=ba1, wa2=wa2, ba2=ba2,
                wc1=wc1, bc1=bc1, wc2=wc2, bc2=bc2,
                wv=wv, bv=bv, wm=wm, bm=bm,
                obs_mean=jnp.zeros((1, num_inputs), jnp.float32),
                obs_std=jnp.ones((1, num_inputs), jnp.float32))


def reference_forward_act(x, p):
    xn = jnp.clip((x - p["obs_mean"]) / (p["obs_std"] + 1e-8), -5.0, 5.0)
    ha = jnp.tanh(xn @ p["wa1"] + p["ba1"])
    ha = jnp.tanh(ha @ p["wa2"] + p["ba2"])
    hc = jnp.tanh(xn @ p["wc1"] + p["bc1"])
    hc = jnp.tanh(hc @ p["wc2"] + p["bc2"])
    value = hc @ p["wv"] + p["bv"]
    action = ha @ p["wm"] + p["bm"]
    return value, ha, action


if __name__ == "__main__":
    B, NUM_INPUTS, NUM_ACTIONS = 8, 32, 4

    key = jax.random.PRNGKey(0)
    kx, kp = jax.random.split(key)
    x = jax.random.normal(kx, (B, NUM_INPUTS), jnp.float32)
    params = init_params(kp, NUM_INPUTS, NUM_ACTIONS)

    fused = fuse_params(params)   # once per policy update, outside the act() hot path

    value, hidden_actor, action = mlp_policy_forward_act(x, fused, NUM_ACTIONS)
    jax.block_until_ready((value, hidden_actor, action))

    v_ref, h_ref, a_ref = reference_forward_act(x, params)
    assert value.shape == (B, 1)
    assert hidden_actor.shape == (B, HIDDEN)
    assert action.shape == (B, NUM_ACTIONS)
    # bf16 MXU operands + bf16 output slab vs a pure-f32 reference -> loosened tolerances.
    assert jnp.allclose(value, v_ref, atol=8e-2), "value mismatch"
    assert jnp.allclose(hidden_actor, h_ref, atol=5e-2), "hidden mismatch"
    assert jnp.allclose(action, a_ref, atol=5e-2), "action mismatch"

    print("KERNEL_OK")
</pallas_src>

<mosaic_0001>
module attributes {stable_mosaic.version = 11 : i64} {
  func.func @mlp_policy_kernel(%arg0: i32, %arg1: memref<8x32xf32, #tpu.memory_space<vmem>>, %arg2: memref<2x32xf32, #tpu.memory_space<vmem>>, %arg3: memref<32x128xbf16, #tpu.memory_space<vmem>>, %arg4: memref<128x128xbf16, #tpu.memory_space<vmem>>, %arg5: memref<128x128xbf16, #tpu.memory_space<vmem>>, %arg6: memref<3x128xf32, #tpu.memory_space<vmem>>, %arg7: memref<8x128xbf16, #tpu.memory_space<vmem>>) attributes {dimension_semantics = [#tpu.dimension_semantics<parallel>], iteration_bounds = array<i64: 1>, scalar_prefetch = 0 : i64, scratch_operands = 0 : i64, tpu.core_type = #tpu.core_type<tc>, window_params = [{transform_indices = @transform_0, window_bounds = array<i64: 8, 32>}, {pipeline_mode = #tpu.pipeline_mode<synchronous>, transform_indices = @transform_1, window_bounds = array<i64: 2, 32>}, {pipeline_mode = #tpu.pipeline_mode<synchronous>, transform_indices = @transform_2, window_bounds = array<i64: 32, 128>}, {pipeline_mode = #tpu.pipeline_mode<synchronous>, transform_indices = @transform_3, window_bounds = array<i64: 128, 128>}, {pipeline_mode = #tpu.pipeline_mode<synchronous>, transform_indices = @transform_4, window_bounds = array<i64: 128, 128>}, {pipeline_mode = #tpu.pipeline_mode<synchronous>, transform_indices = @transform_5, window_bounds = array<i64: 3, 128>}, {transform_indices = @transform_6, window_bounds = array<i64: 8, 128>}]} {
    %c0 = arith.constant 0 : index
    %c0_0 = arith.constant 0 : index
    %0 = vector.load %arg1[%c0, %c0_0] : memref<8x32xf32, #tpu.memory_space<vmem>>, vector<8x32xf32>
    %c0_1 = arith.constant 0 : index
    %c0_2 = arith.constant 0 : index
    %1 = vector.load %arg2[%c0_1, %c0_2] : memref<2x32xf32, #tpu.memory_space<vmem>>, vector<1x32xf32>
    %2 = vector.broadcast %1 : vector<1x32xf32> to vector<8x32xf32>
    %3 = arith.mulf %0, %2 : vector<8x32xf32>
    %c1 = arith.constant 1 : index
    %c0_3 = arith.constant 0 : index
    %4 = vector.load %arg2[%c1, %c0_3] : memref<2x32xf32, #tpu.memory_space<vmem>>, vector<1x32xf32>
    %5 = vector.broadcast %4 : vector<1x32xf32> to vector<8x32xf32>
    %6 = arith.addf %3, %5 : vector<8x32xf32>
    %cst = arith.constant -5.000000e+00 : f32
    %cst_4 = arith.constant 5.000000e+00 : f32
    %7 = vector.broadcast %cst : f32 to vector<8x32xf32>
    %8 = arith.maximumf %7, %6 : vector<8x32xf32>
    %9 = vector.broadcast %cst_4 : f32 to vector<8x32xf32>
    %10 = arith.minimumf %9, %8 : vector<8x32xf32>
    %11 = arith.truncf %10 : vector<8x32xf32> to vector<8x32xbf16>
    %c0_5 = arith.constant 0 : index
    %c0_6 = arith.constant 0 : index
    %12 = vector.load %arg6[%c0_5, %c0_6] : memref<3x128xf32, #tpu.memory_space<vmem>>, vector<3x128xf32>
    %c0_7 = arith.constant 0 : index
    %c0_8 = arith.constant 0 : index
    %13 = vector.load %arg3[%c0_7, %c0_8] : memref<32x128xbf16, #tpu.memory_space<vmem>>, vector<32x128xbf16>
    %cst_9 = arith.constant dense<0.000000e+00> : vector<8x128xf32>
    %14 = tpu.matmul %11, %13, %cst_9 {dimension_numbers = #tpu.dot_dimension_numbers<[1], [0], [0], [1], [0, 0, 1, 1], [], []>} : vector<8x32xbf16>, vector<32x128xbf16>, vector<8x128xf32> -> vector<8x128xf32>
    %15 = vector.extract_strided_slice %12 {offsets = [0, 0], sizes = [1, 128], strides = [1, 1]} : vector<3x128xf32> to vector<1x128xf32>
    %16 = vector.broadcast %15 : vector<1x128xf32> to vector<8x128xf32>
    %17 = arith.addf %14, %16 : vector<8x128xf32>
    %18 = math.tanh %17 : vector<8x128xf32>
    %19 = arith.truncf %18 : vector<8x128xf32> to vector<8x128xbf16>
    %c0_10 = arith.constant 0 : index
    %c0_11 = arith.constant 0 : index
    %20 = vector.load %arg4[%c0_10, %c0_11] : memref<128x128xbf16, #tpu.memory_space<vmem>>, vector<128x128xbf16>
    %cst_12 = arith.constant dense<0.000000e+00> : vector<8x128xf32>
    %21 = tpu.matmul %19, %20, %cst_12 {dimension_numbers = #tpu.dot_dimension_numbers<[1], [0], [0], [1], [0, 0, 1, 1], [], []>} : vector<8x128xbf16>, vector<128x128xbf16>, vector<8x128xf32> -> vector<8x128xf32>
    %22 = vector.extract_strided_slice %12 {offsets = [1, 0], sizes = [1, 128], strides = [1, 1]} : vector<3x128xf32> to vector<1x128xf32>
    %23 = vector.broadcast %22 : vector<1x128xf32> to vector<8x128xf32>
    %24 = arith.addf %21, %23 : vector<8x128xf32>
    %25 = math.tanh %24 : vector<8x128xf32>
    %26 = arith.truncf %25 : vector<8x128xf32> to vector<8x128xbf16>
    %c0_13 = arith.constant 0 : index
    %c0_14 = arith.constant 0 : index
    %27 = vector.load %arg5[%c0_13, %c0_14] : memref<128x128xbf16, #tpu.memory_space<vmem>>, vector<128x128xbf16>
    %cst_15 = arith.constant dense<0.000000e+00> : vector<8x128xf32>
    %28 = tpu.matmul %26, %27, %cst_15 {dimension_numbers = #tpu.dot_dimension_numbers<[1], [0], [0], [1], [0, 0, 1, 1], [], []>} : vector<8x128xbf16>, vector<128x128xbf16>, vector<8x128xf32> -> vector<8x128xf32>
    %29 = vector.extract_strided_slice %12 {offsets = [2, 0], sizes = [1, 128], strides = [1, 1]} : vector<3x128xf32> to vector<1x128xf32>
    %30 = vector.broadcast %29 : vector<1x128xf32> to vector<8x128xf32>
    %31 = arith.addf %28, %30 : vector<8x128xf32>
    %32 = arith.truncf %31 : vector<8x128xf32> to vector<8x128xbf16>
    %c0_16 = arith.constant 0 : index
    %c0_17 = arith.constant 0 : index
    %33 = vector.load %arg7[%c0_16, %c0_17] : memref<8x128xbf16, #tpu.memory_space<vmem>>, vector<8x128xbf16>
    tpu.vector_store %arg7[%c0_16, %c0_17], %32 {strides = array<i32>} : memref<8x128xbf16, #tpu.memory_space<vmem>>, vector<8x128xbf16>,
    return
  }
  func.func @transform_0(%arg0: i32) -> (i32, i32) {
    %c0_i32 = arith.constant 0 : i32
    %c0_i32_0 = arith.constant 0 : i32
    return %arg0, %c0_i32 : i32, i32
  }
  func.func @transform_1(%arg0: i32) -> (i32, i32) {
    %c0_i32 = arith.constant 0 : i32
    %c0_i32_0 = arith.constant 0 : i32
    %c0_i32_1 = arith.constant 0 : i32
    return %c0_i32, %c0_i32_0 : i32, i32
  }
  func.func @transform_2(%arg0: i32) -> (i32, i32) {
    %c0_i32 = arith.constant 0 : i32
    %c0_i32_0 = arith.constant 0 : i32
    %c0_i32_1 = arith.constant 0 : i32
    return %c0_i32, %c0_i32_0 : i32, i32
  }
  func.func @transform_3(%arg0: i32) -> (i32, i32) {
    %c0_i32 = arith.constant 0 : i32
    %c0_i32_0 = arith.constant 0 : i32
    %c0_i32_1 = arith.constant 0 : i32
    return %c0_i32, %c0_i32_0 : i32, i32
  }
  func.func @transform_4(%arg0: i32) -> (i32, i32) {
    %c0_i32 = arith.constant 0 : i32
    %c0_i32_0 = arith.constant 0 : i32
    %c0_i32_1 = arith.constant 0 : i32
    return %c0_i32, %c0_i32_0 : i32, i32
  }
  func.func @transform_5(%arg0: i32) -> (i32, i32) {
    %c0_i32 = arith.constant 0 : i32
    %c0_i32_0 = arith.constant 0 : i32
    %c0_i32_1 = arith.constant 0 : i32
    return %c0_i32, %c0_i32_0 : i32, i32
  }
  func.func @transform_6(%arg0: i32) -> (i32, i32) {
    %c0_i32 = arith.constant 0 : i32
    %c0_i32_0 = arith.constant 0 : i32
    return %arg0, %c0_i32 : i32, i32
  }
}

</mosaic_0001>

<bundles_post_ra>
// kernel: mlp_policy_forward_act.1
= control target key start
LH: loop header
LB: loop body
LE: loop exit
PB: predicated region body
PF: predicated region fallthrough
CT: control target
= control target key end

     0   :  { %11 = vsyncpa [#allocation3], 0  ;;  %s649_s0 = inlined_call_operand.hbm [shape: f32[8,32], index: 0, kind: input, shape index: {}]   ;;  %s650_s1 = inlined_call_operand.hbm [shape: f32[2,32], index: 1, kind: input, shape index: {}]   ;;  %s651_s2 = inlined_call_operand.hbm [shape: bf16[32,128], index: 2, kind: input, shape index: {}]   ;;  %s652_s3 = inlined_call_operand.hbm [shape: bf16[128,128], index: 3, kind: input, shape index: {}]   ;;  %s653_s4 = inlined_call_operand.hbm [shape: bf16[128,128], index: 4, kind: input, shape index: {}]   ;;  %s654_s5 = inlined_call_operand.hbm [shape: f32[3,128], index: 5, kind: input, shape index: {}]   ;;  %s655_s6 = inlined_call_operand.vmem [shape: bf16[8,128], index: 6, kind: output, shape index: {}]  }
   0x1   :  { %12 = vsyncpa [#allocation5], 0 }
   0x2   :  { %13 = vsyncpa [#allocation8], 0  ;;  %s31_s23 = sshll.u32 %s650_s1, 4  ;;  %s32_s23 = int_to_ptr.hbm [resolvable:$true] %s31_s23 }
   0x3   :  { %14 = vsyncpa [#allocation11], 0  ;;  %s585_s24 = smov [#allocation4]   ;;  %s54_s28 = sshll.u32 %s652_s3, 4  ;;  %s55_s28 = int_to_ptr.hbm [resolvable:$true] %s54_s28 }
   0x4   :  { %s33_s25 = sshll.u32 %s585_s24, 4  ;;  %s586_s29 = smov [#allocation7]   ;;  %s34_s25 = int_to_ptr.vmem [resolvable:$true] %s33_s25 }
   0x5   :  { %36 = dma.hbm_to_vmem [thread:$0]  %s32_s23, 32, %s34_s25, [#allocation5]  }
   0x6   :  { %s56_s30 = sshll.u32 %s586_s29, 4  ;;  %s20_s9 = sshll.u32 %s649_s0, 4  ;;  %s57_s30 = int_to_ptr.vmem [resolvable:$true] %s56_s30  ;;  %s21_s9 = int_to_ptr.hbm [resolvable:$true] %s20_s9 }
   0x7   :  { %s587_s1 = smov 64   ;;  %s588_s10 = smov 4  }
   0x8   :  { %62 = dma.hbm_to_vmem [thread:$0]  %s55_s28, 1024, %s57_s30, [#allocation8], %s587_s1, %s587_s1, %s588_s10  }
   0x9   :  { %s41_s13 = sshll.u32 %s651_s2, 4  ;;  %s589_s14 = smov [#allocation2]   ;;  %s42_s13 = int_to_ptr.hbm [resolvable:$true] %s41_s13 }
   0xa   :  { %s22_s15 = sshll.u32 %s589_s14, 4  ;;  %s590_s3 = smov [#allocation6]   ;;  %s23_s15 = int_to_ptr.vmem [resolvable:$true] %s22_s15 }
   0xb   :  { %25 = dma.hbm_to_vmem [thread:$0]  %s21_s9, 128, %s23_s15, [#allocation3]  }
   0xc   :  { %s43_s16 = sshll.u32 %s590_s3, 4  ;;  %s67_s0 = sshll.u32 %s653_s4, 4  ;;  %s44_s16 = int_to_ptr.vmem [resolvable:$true] %s43_s16  ;;  %s68_s0 = int_to_ptr.hbm [resolvable:$true] %s67_s0 }
   0xd   :  { %49 = dma.hbm_to_vmem [thread:$0]  %s42_s13, 256, %s44_s16, [#allocation5], %s587_s1, %s587_s1, %s588_s10  }
   0xe   :  { %s81_s21 = sshll.u32 %s654_s5, 4  ;;  %s591_s22 = smov [#allocation9]   ;;  %s82_s21 = int_to_ptr.hbm [resolvable:$true] %s81_s21 }
   0xf   :  { %s69_s2 = sshll.u32 %s591_s22, 4  ;;  %s592_s23 = smov [#allocation10]   ;;  %s70_s2 = int_to_ptr.vmem [resolvable:$true] %s69_s2 }
  0x10   :  { %75 = dma.hbm_to_vmem [thread:$0]  %s68_s0, 1024, %s70_s2, [#allocation8], %s587_s1, %s587_s1, %s588_s10  }
  0x11   :  { %s83_s24 = sshll.u32 %s592_s23, 4  ;;  %s84_s24 = int_to_ptr.vmem [resolvable:$true] %s83_s24 }
  0x12   :  { %86 = dma.hbm_to_vmem [thread:$0]  %s82_s21, 64, %s84_s24, [#allocation11]  }
  0x13   :  { %577 = dma.done.wait [#allocation3], 128  }
  0x14   :  { %578 = vsyncadd [#allocation3], 4294967168 }
  0x15   :  { %579 = dma.done.wait [#allocation5], 288  }
  0x16   :  { %580 = vsyncadd [#allocation5], 4294967008 }
  0x17   :  { %581 = dma.done.wait [#allocation8], 2048  }
  0x18   :  { %582 = vsyncadd [#allocation8], 4294965248 }
  0x19   :  { %583 = dma.done.wait [#allocation11], 64  }
  0x1a   :  { %584 = vsyncadd [#allocation11], 4294967232  ;;  %v402_v0 = vld [vmem:[#allocation6 + $0x8] sm:$0xff]  ;;  %v112_v1 = vld [vmem:[#allocation2] sm:$0xff]  ;;  %vm140_vm0 = vcmask 261120  }
  0x1b   :  { %v427_v2 = vld [vmem:[#allocation4] ss:$0 sm:$0xff]  ;;  %150 = vmatpush.bf16.msra.mxu0 %v402_v0  ;;  %v401_v3 = vld [vmem:[#allocation6] sm:$0xff]  ;;  %v428_v4 = vld [vmem:[#allocation4 + $0x1] ss:$0 sm:$0xff] }
  0x1c   :  { %v410_v5 = vld [vmem:[#allocation7 + $0x38] sm:$0xff]  ;;  %v115_v6 = vmul.f32 %v427_v2, %v112_v1  ;;  %v409_v7 = vld [vmem:[#allocation7 + $0x30] sm:$0xff]  ;;  %v408_v10 = vld [vmem:[#allocation7 + $0x28] sm:$0xff] }
  0x1d   :  { %224 = vmatpush.bf16.msra.mxu1 %v410_v5  ;;  %v407_v12 = vld [vmem:[#allocation7 + $0x20] sm:$0xff]  ;;  %v406_v13 = vld [vmem:[#allocation7 + $0x18] sm:$0xff]  ;;  %v405_v14 = vld [vmem:[#allocation7 + $0x10] sm:$0xff] }
  0x1e   :  { %v118_v8 = vadd.f32 %v428_v4, %v115_v6  ;;  %v404_v15 = vld [vmem:[#allocation7 + $0x8] sm:$0xff]  ;;  %v403_v16 = vld [vmem:[#allocation7] sm:$0xff]  ;;  %v418_v17 = vld [vmem:[#allocation9 + $0x38] sm:$0xff] }
  0x1f   :  { %151 = vmatpush.bf16.msra.mxu0 %v401_v3  ;;  %304 = vmatpush.bf16.msra.mxu2 %v418_v17  ;;  %v417_v18 = vld [vmem:[#allocation9 + $0x30] sm:$0xff]  ;;  %v416_v19 = vld [vmem:[#allocation9 + $0x28] sm:$0xff]  ;;  %v415_v20 = vld [vmem:[#allocation9 + $0x20] sm:$0xff] }
  0x20   :  { %v327_v9 = vclamps-f32 %v118_v8, 5.0  ;;  %v122_v21 = vld [vmem:[#allocation10] sm:$0x7]  ;;  %v414_v22 = vld [vmem:[#allocation9 + $0x18] sm:$0xff]  ;;  %v413_v29 = vld [vmem:[#allocation9 + $0x10] sm:$0xff] }
  0x21   :  { %225 = vmatpush.bf16.msra.mxu1 %v409_v7  ;;  %v127_v23 = vperm.slane %v122_v21, 0  ;;  %v412_v30 = vld [vmem:[#allocation9 + $0x8] sm:$0xff]  ;;  %v411_v31 = vld [vmem:[#allocation9] sm:$0xff]  ;;  %v175_v32 = vperm.slane %v122_v21, 1  ;;  %v255_v38 = vperm.slane %v122_v21, 2 }
  0x22   :  { %v121_v11 = vpack.c.bf16 %v327_v9, %v327_v9 }
  0x23   :  { %305 = vmatpush.bf16.msra.mxu2 %v417_v18 }
  0x24   :  { %336 = vmatmul.msk.bf16.vlgmr.msra.gmra.mxu0 %vm140_vm0, %v121_v11 }
  0x25   :  { %226 = vmatpush.bf16.msra.mxu1 %v408_v10 }
  0x27   :  { %306 = vmatpush.bf16.msra.mxu2 %v416_v19 }
  0x29   :  { %227 = vmatpush.bf16.msra.mxu1 %v407_v12 }
  0x2b   :  { %307 = vmatpush.bf16.msra.mxu2 %v415_v20 }
  0x2d   :  { %228 = vmatpush.bf16.msra.mxu1 %v406_v13 }
  0x2f   :  { %308 = vmatpush.bf16.msra.mxu2 %v414_v22 }
  0x31   :  { %229 = vmatpush.bf16.msra.mxu1 %v405_v14 }
  0x33   :  { %309 = vmatpush.bf16.msra.mxu2 %v413_v29 }
  0x35   :  { %230 = vmatpush.bf16.msra.mxu1 %v404_v15 }
  0x37   :  { %310 = vmatpush.bf16.msra.mxu2 %v412_v30 }
  0x39   :  { %231 = vmatpush.bf16.msra.mxu1 %v403_v16 }
  0x3b   :  { %311 = vmatpush.bf16.msra.mxu2 %v411_v31 }
  0xa1   :  { %v153_v24 = vpop.f32.mrf.mxu0 }
  0xa2   :  { %v154_v25 = vadd.f32 %v153_v24, %v127_v23 }
  0xa4   :  { %429 = vtanh.f32 %v154_v25 }
  0xa9   :  { %v155_v26 = vpop.f32.mrf.mxu0 }
  0xaa   :  { %v430_v27 = vpop.eup %429 }
  0xab   :  { %v158_v28 = vpack.c.bf16 %v430_v27, %v430_v27 }
  0xad   :  { %232 = vmatmul.bf16.vlgmr.msra.gmra.mxu1 %v158_v28 }
 0x12a   :  { %v233_v33 = vpop.f32.mrf.mxu1 }
 0x12b   :  { %v234_v34 = vadd.f32 %v233_v33, %v175_v32 }
 0x12d   :  { %431 = vtanh.f32 %v234_v34 }
 0x132   :  { %v235_v35 = vpop.f32.mrf.mxu1 }
 0x133   :  { %v432_v36 = vpop.eup %431 }
 0x134   :  { %v238_v37 = vpack.c.bf16 %v432_v36, %v432_v36 }
 0x136   :  { %312 = vmatmul.bf16.vlgmr.msra.gmra.mxu2 %v238_v37 }
 0x1b9   :  { %v313_v39 = vpop.f32.mrf.mxu2 }
 0x1ba   :  { %v314_v40 = vadd.f32 %v313_v39, %v255_v38 }
 0x1bc   :  { %v317_v41 = vpack.c.bf16 %v314_v40, %v314_v40 }
 0x1be   :  { %318 = vst [vmem:[%s655_s6] sm:$0xf] %v317_v41 }
 0x1c1   :  { %v315_v42 = vpop.f32.mrf.mxu2 }
 0x1c2   :  { %323 = vsyncpa [#allocation3], 1 }
 0x1c3   :  { %324 = vsyncpa [#allocation5], 1 }
 0x1c4   :  { %325 = vsyncpa [#allocation8], 1 }
 0x1c5   :  { %326 = vsyncpa [#allocation11], 1 }

</bundles_post_ra>
